<compile_context>
chip_gen: v6e
topology: v6e:2x2x1
jax: 0.10.0
libtpu: 0.0.40
codegen_flags: <defaults>
</compile_context>

<pallas_src>
import functools

import jax
import jax.numpy as jnp
from jax.experimental import pallas as pl
from jax.experimental.pallas import tpu as pltpu


def _round_up(n, m):
    return ((n + m - 1) // m) * m


def _cdiv(a, b):
    return -(-a // b)


# ----------------------------- Pallas kernel ------------------------------- #
def _fm_kernel(act_ref, gw_ref, gb_ref, veb_ref, veg_ref, v2b_ref, v2g_ref,
               w0_ref, out_ref, *, k, d_base_pad, clip_min, clip_max):
    f32 = jnp.float32
    cdt = veb_ref.dtype                      # MXU operand / compute dtype

    # Batch-on-lane layout: (features, TILE_B).  Static, sublane-aligned slices.
    xb = act_ref[:d_base_pad, :]             # (Db_pad, Bt)  state|uemb|memb|0
    gn = act_ref[d_base_pad:, :]             # (Ng_pad, Bt)  genres|0

    # g_embedding (transposed):  gemb^T = Wg^T @ genres^T + bg^T
    gemb32 = jnp.dot(gw_ref[...], gn, preferred_element_type=f32) + gb_ref[...]
    gemb = gemb32.astype(cdt)                                     # (Dg, Bt)

    # r1^T = [v | w1]^T @ xx^T   (row-block split at base/gemb -> no concat)
    r1 = (jnp.dot(veb_ref[...], xb, preferred_element_type=f32)
          + jnp.dot(veg_ref[...], gemb, preferred_element_type=f32))   # (k+1, Bt)

    # r2^T = (v*v)^T @ (xx*xx)^T   (v*v precomputed in the wrapper)
    r2 = (jnp.dot(v2b_ref[...], xb * xb, preferred_element_type=f32)
          + jnp.dot(v2g_ref[...], (gemb32 * gemb32).astype(cdt),
                    preferred_element_type=f32))                       # (k, Bt)

    inter1 = r1[:k, :]                        # xx @ v   (k, Bt)
    lin = r1[k:k + 1, :]                      # xx @ w1  (1, Bt), fused row
    interaction = 0.5 * jnp.sum(inter1 * inter1 - r2, axis=0, keepdims=True)
    pred = w0_ref[0] + lin + interaction      # w0 from SMEM (scalar path)
    out_ref[...] = jnp.clip(pred, clip_min, clip_max)   # lane-dense (1, Bt) store


# ----------------------------- tile selection ------------------------------ #
def _choose_batch_tiling(B, *, max_tile_b, min_grid, d_total, itemsize,
                         lane=128, vmem_budget_bytes=8 * 1024 * 1024):
    """Pick (tile_b, grid) so tiles are 128-lane multiples, the double-buffered
    activation stays under a conservative VMEM budget, batch-padding waste is
    small, and large batches get >= min_grid steps (v7x: 2 TensorCores)."""
    d_pad = _round_up(max(d_total, 8), 8)
    max_by_vmem = (vmem_budget_bytes // (2 * d_pad * itemsize)) // lane * lane
    max_tile_b = max(lane, min(max_tile_b, max_by_vmem))

    b_lane = _round_up(max(B, 1), lane)
    n = max(1, _cdiv(b_lane, max_tile_b))
    # Only force a multi-step grid when the batch is big enough that the extra
    # lane padding is noise; on 1-TC chips an extra grid step costs ~0.35 us.
    if n < min_grid and B >= min_grid * 4 * lane:
        n = min_grid
    tile_b = _round_up(_cdiv(b_lane, n), lane)
    grid_n = max(1, _cdiv(B, tile_b))
    return tile_b, grid_n


# ------------------------------- wrapper ----------------------------------- #
def fm_forward(x, params, *, fm_feature_size, clip_min, clip_max,
               max_tile_b=8192, min_grid=2, compute_dtype=jnp.float32):
    """x: (batch, raw_feature) float32. Returns (batch, 1) float32."""
    B = x.shape[0]
    n_genres = fm_feature_size - 2

    # --- glue: slice raw input, embedding table gathers ---
    uids = x[:, -fm_feature_size].astype(jnp.int32)
    mids = x[:, -(fm_feature_size - 1)].astype(jnp.int32)
    genres = x[:, -n_genres:]
    x_state = x[:, :x.shape[1] - fm_feature_size]

    uemb = jnp.take(params["u_emb"], uids, axis=0)     # (B, u_emb_dim)
    memb = jnp.take(params["m_emb"], mids, axis=0)     # (B, m_emb_dim)

    d_base = x_state.shape[1] + uemb.shape[1] + memb.shape[1]
    d_g = params["g_w"].shape[1]
    k = params["v"].shape[1]
    feature_size = params["v"].shape[0]
    assert d_base + d_g == feature_size, "v/w1 row split inconsistent with layout"

    d_base_pad = _round_up(max(d_base, 8), 8)
    base_pad = d_base_pad - d_base
    n_genres_pad = _round_up(n_genres, 8)
    g_pad = n_genres_pad - n_genres
    d_total = d_base_pad + n_genres_pad

    # --- feature-major (transposed) activations: batch on the 128-lane axis ---
    pieces = [x_state.T, uemb.T, memb.T]
    if base_pad:
        pieces.append(jnp.zeros((base_pad, B), x.dtype))
    pieces.append(genres.T)
    if g_pad:
        pieces.append(jnp.zeros((g_pad, B), x.dtype))
    act = jnp.concatenate(pieces, axis=0).astype(compute_dtype)    # (d_total, B)

    # --- weight preprocessing (once, loop-invariant) ---
    v_ext_t = jnp.concatenate([params["v"], params["w1"]], axis=1).T   # (k+1, F)
    v_sq_t = (params["v"] * params["v"]).T                             # (k, F)

    def _split_pad(w_t):
        base = w_t[:, :d_base]
        if base_pad:
            base = jnp.pad(base, ((0, 0), (0, base_pad)))
        return base.astype(compute_dtype), w_t[:, d_base:].astype(compute_dtype)

    veb, veg = _split_pad(v_ext_t)                     # (k+1, Db_pad), (k+1, Dg)
    v2b, v2g = _split_pad(v_sq_t)                      # (k, Db_pad),   (k, Dg)
    gw = params["g_w"].T                               # (Dg, n_genres)
    if g_pad:
        gw = jnp.pad(gw, ((0, 0), (0, g_pad)))         # (Dg, Ng_pad)
    gw = gw.astype(compute_dtype)
    gb = params["g_b"].T.astype(jnp.float32)           # (Dg, 1), f32 bias add
    w0 = params["w0"].reshape(1).astype(jnp.float32)

    # --- batch tiling / padding ---
    tile_b, grid_n = _choose_batch_tiling(
        B, max_tile_b=max_tile_b, min_grid=min_grid, d_total=d_total,
        itemsize=jnp.dtype(compute_dtype).itemsize)
    b_pad = tile_b * grid_n
    if b_pad != B:
        act = jnp.pad(act, ((0, 0), (0, b_pad - B)))

    kernel = functools.partial(_fm_kernel, k=k, d_base_pad=d_base_pad,
                               clip_min=float(clip_min), clip_max=float(clip_max))

    def resident(a):
        # weights: same block every grid step -> stays resident in VMEM
        return pl.BlockSpec(a.shape, lambda i: (0, 0))

    out = pl.pallas_call(
        kernel,
        out_shape=jax.ShapeDtypeStruct((1, b_pad), jnp.float32),
        grid=(grid_n,),
        in_specs=[
            pl.BlockSpec((d_total, tile_b), lambda i: (0, i)),   # activations
            resident(gw), resident(gb),                          # g_embedding
            resident(veb), resident(veg),                        # [v|w1]^T split
            resident(v2b), resident(v2g),                        # (v*v)^T split
            pl.BlockSpec(memory_space=pltpu.MemorySpace.SMEM),   # w0 scalar
        ],
        out_specs=pl.BlockSpec((1, tile_b), lambda i: (0, i)),   # lane-dense row
        compiler_params=pltpu.CompilerParams(
            dimension_semantics=("parallel",)),
    )(act, gw, gb, veb, veg, v2b, v2g, w0)

    return out[0, :B].reshape(B, 1)


# -------------------------- pure-JAX reference ------------------------------ #
def fm_reference(x, params, *, fm_feature_size, clip_min, clip_max):
    uids = x[:, -fm_feature_size].astype(jnp.int32)
    mids = x[:, -(fm_feature_size - 1)].astype(jnp.int32)
    genres = x[:, -(fm_feature_size - 2):]
    x_state = x[:, :x.shape[1] - fm_feature_size]
    uemb = jnp.take(params["u_emb"], uids, axis=0)
    memb = jnp.take(params["m_emb"], mids, axis=0)
    gemb = genres @ params["g_w"] + params["g_b"]
    xx = jnp.concatenate([x_state, uemb, memb, gemb], axis=1)
    inter_1 = xx @ params["v"]
    inter_2 = (xx * xx) @ (params["v"] * params["v"])
    interaction = 0.5 * jnp.sum(inter_1 * inter_1 - inter_2, axis=1, keepdims=True)
    pred = params["w0"][0, 0] + xx @ params["w1"] + interaction
    return jnp.clip(pred, clip_min, clip_max)


# ------------------------- deterministic param init ------------------------ #
def _xavier_normal(key, shape):
    fan_in, fan_out = shape[0], shape[1]
    std = (2.0 / (fan_in + fan_out)) ** 0.5
    return std * jax.random.normal(key, shape, dtype=jnp.float32)


def init_params(key, *, max_uid, max_mid, u_emb_dim, m_emb_dim, g_emb_dim,
                n_genres, feature_size, k, init_std):
    ks = jax.random.split(key, 7)
    return {
        # nn.Embedding default init: N(0, 1)
        "u_emb": jax.random.normal(ks[0], (max_uid + 1, u_emb_dim), jnp.float32),
        "m_emb": jax.random.normal(ks[1], (max_mid + 1, m_emb_dim), jnp.float32),
        # nn.Linear(g): weight stored transposed for right-multiply, bias (1, Dg)
        "g_w": _xavier_normal(ks[2], (n_genres, g_emb_dim)),
        "g_b": 0.01 * jax.random.normal(ks[3], (1, g_emb_dim), jnp.float32),
        # FM params
        "w0": init_std * jax.random.normal(ks[4], (1, 1), jnp.float32),
        "w1": _xavier_normal(ks[5], (feature_size, 1)),
        "v": _xavier_normal(ks[6], (feature_size, k)),
    }


def _make_inputs(key, B, *, state_dim, n_genres, max_uid, max_mid):
    kx, ku, km, kg = jax.random.split(key, 4)
    state = jax.random.normal(kx, (B, state_dim), jnp.float32)
    uids = jax.random.randint(ku, (B, 1), 0, max_uid + 1).astype(jnp.float32)
    mids = jax.random.randint(km, (B, 1), 0, max_mid + 1).astype(jnp.float32)
    genres = jax.random.bernoulli(kg, 0.3, (B, n_genres)).astype(jnp.float32)
    return jnp.concatenate([state, uids, mids, genres], axis=1)


# ----------------------------------- main ----------------------------------- #
if __name__ == "__main__":
    B = 8
    state_dim = 12           # RL state part kept when without_rl=False
    u_emb_dim = 16
    m_emb_dim = 16
    g_emb_dim = 16
    n_genres = 18
    fm_feature_size = 2 + n_genres                                   # 20
    feature_size = state_dim + u_emb_dim + m_emb_dim + g_emb_dim     # 60
    k = 8
    max_uid, max_mid = 50, 100
    clip_min, clip_max = 0.0, 5.0

    key = jax.random.PRNGKey(0)
    kp, kx1, kx2 = jax.random.split(key, 3)

    params = init_params(
        kp, max_uid=max_uid, max_mid=max_mid,
        u_emb_dim=u_emb_dim, m_emb_dim=m_emb_dim, g_emb_dim=g_emb_dim,
        n_genres=n_genres, feature_size=feature_size, k=k, init_std=0.01)

    # Raw input x: [state (12) | uid (1) | mid (1) | genres (18)] = 32 cols
    x = _make_inputs(kx1, B, state_dim=state_dim, n_genres=n_genres,
                     max_uid=max_uid, max_mid=max_mid)

    out = fm_forward(x, params, fm_feature_size=fm_feature_size,
                     clip_min=clip_min, clip_max=clip_max)
    jax.block_until_ready(out)
    assert out.shape == (B, 1) and out.dtype == jnp.float32
    ref = fm_reference(x, params, fm_feature_size=fm_feature_size,
                       clip_min=clip_min, clip_max=clip_max)
    assert jnp.allclose(out, ref, rtol=1e-3, atol=1e-3), "mismatch vs reference"

    # second run exercising the multi-tile (grid>=2) path + batch padding
    B2 = 1100
    x2 = _make_inputs(kx2, B2, state_dim=state_dim, n_genres=n_genres,
                      max_uid=max_uid, max_mid=max_mid)
    out2 = fm_forward(x2, params, fm_feature_size=fm_feature_size,
                      clip_min=clip_min, clip_max=clip_max)
    jax.block_until_ready(out2)
    assert out2.shape == (B2, 1) and out2.dtype == jnp.float32
    ref2 = fm_reference(x2, params, fm_feature_size=fm_feature_size,
                        clip_min=clip_min, clip_max=clip_max)
    assert jnp.allclose(out2, ref2, rtol=1e-3, atol=1e-3), "mismatch (large batch)"

    print("KERNEL_OK")
</pallas_src>

<mosaic_0001>
module attributes {stable_mosaic.version = 11 : i64} {
  func.func @_fm_kernel(%arg0: i32, %arg1: memref<72x128xf32, #tpu.memory_space<vmem>>, %arg2: memref<16x24xf32, #tpu.memory_space<vmem>>, %arg3: memref<16x1xf32, #tpu.memory_space<vmem>>, %arg4: memref<9x48xf32, #tpu.memory_space<vmem>>, %arg5: memref<9x16xf32, #tpu.memory_space<vmem>>, %arg6: memref<8x48xf32, #tpu.memory_space<vmem>>, %arg7: memref<8x16xf32, #tpu.memory_space<vmem>>, %arg8: memref<1xf32, #tpu.memory_space<smem>>, %arg9: memref<1x128xf32, #tpu.memory_space<vmem>>) attributes {dimension_semantics = [#tpu.dimension_semantics<parallel>], iteration_bounds = array<i64: 1>, scalar_prefetch = 0 : i64, scratch_operands = 0 : i64, tpu.core_type = #tpu.core_type<tc>, window_params = [{transform_indices = @transform_0, window_bounds = array<i64: 72, 128>}, {pipeline_mode = #tpu.pipeline_mode<synchronous>, transform_indices = @transform_1, window_bounds = array<i64: 16, 24>}, {pipeline_mode = #tpu.pipeline_mode<synchronous>, transform_indices = @transform_2, window_bounds = array<i64: 16, 1>}, {pipeline_mode = #tpu.pipeline_mode<synchronous>, transform_indices = @transform_3, window_bounds = array<i64: 9, 48>}, {pipeline_mode = #tpu.pipeline_mode<synchronous>, transform_indices = @transform_4, window_bounds = array<i64: 9, 16>}, {pipeline_mode = #tpu.pipeline_mode<synchronous>, transform_indices = @transform_5, window_bounds = array<i64: 8, 48>}, {pipeline_mode = #tpu.pipeline_mode<synchronous>, transform_indices = @transform_6, window_bounds = array<i64: 8, 16>}, {transform_indices = @transform_7, window_bounds = array<i64: 1>}, {transform_indices = @transform_8, window_bounds = array<i64: 1, 128>}]} {
    %c0 = arith.constant 0 : index
    %c0_0 = arith.constant 0 : index
    %0 = vector.load %arg1[%c0, %c0_0] : memref<72x128xf32, #tpu.memory_space<vmem>>, vector<48x128xf32>
    %c48 = arith.constant 48 : index
    %c0_1 = arith.constant 0 : index
    %1 = vector.load %arg1[%c48, %c0_1] : memref<72x128xf32, #tpu.memory_space<vmem>>, vector<24x128xf32>
    %c0_2 = arith.constant 0 : index
    %c0_3 = arith.constant 0 : index
    %2 = vector.load %arg2[%c0_2, %c0_3] : memref<16x24xf32, #tpu.memory_space<vmem>>, vector<16x24xf32>
    %cst = arith.constant dense<0.000000e+00> : vector<16x128xf32>
    %3 = tpu.matmul %2, %1, %cst {dimension_numbers = #tpu.dot_dimension_numbers<[1], [0], [0], [1], [0, 0, 1, 1], [], []>} : vector<16x24xf32>, vector<24x128xf32>, vector<16x128xf32> -> vector<16x128xf32>
    %c0_4 = arith.constant 0 : index
    %c0_5 = arith.constant 0 : index
    %4 = vector.load %arg3[%c0_4, %c0_5] : memref<16x1xf32, #tpu.memory_space<vmem>>, vector<16x1xf32>
    %5 = vector.broadcast %4 : vector<16x1xf32> to vector<16x128xf32>
    %6 = arith.addf %3, %5 : vector<16x128xf32>
    %c0_6 = arith.constant 0 : index
    %c0_7 = arith.constant 0 : index
    %7 = vector.load %arg4[%c0_6, %c0_7] : memref<9x48xf32, #tpu.memory_space<vmem>>, vector<9x48xf32>
    %cst_8 = arith.constant dense<0.000000e+00> : vector<9x128xf32>
    %8 = tpu.matmul %7, %0, %cst_8 {dimension_numbers = #tpu.dot_dimension_numbers<[1], [0], [0], [1], [0, 0, 1, 1], [], []>} : vector<9x48xf32>, vector<48x128xf32>, vector<9x128xf32> -> vector<9x128xf32>
    %c0_9 = arith.constant 0 : index
    %c0_10 = arith.constant 0 : index
    %9 = vector.load %arg5[%c0_9, %c0_10] : memref<9x16xf32, #tpu.memory_space<vmem>>, vector<9x16xf32>
    %cst_11 = arith.constant dense<0.000000e+00> : vector<9x128xf32>
    %10 = tpu.matmul %9, %6, %cst_11 {dimension_numbers = #tpu.dot_dimension_numbers<[1], [0], [0], [1], [0, 0, 1, 1], [], []>} : vector<9x16xf32>, vector<16x128xf32>, vector<9x128xf32> -> vector<9x128xf32>
    %11 = arith.addf %8, %10 : vector<9x128xf32>
    %c0_12 = arith.constant 0 : index
    %c0_13 = arith.constant 0 : index
    %12 = vector.load %arg6[%c0_12, %c0_13] : memref<8x48xf32, #tpu.memory_space<vmem>>, vector<8x48xf32>
    %13 = arith.mulf %0, %0 : vector<48x128xf32>
    %cst_14 = arith.constant dense<0.000000e+00> : vector<8x128xf32>
    %14 = tpu.matmul %12, %13, %cst_14 {dimension_numbers = #tpu.dot_dimension_numbers<[1], [0], [0], [1], [0, 0, 1, 1], [], []>} : vector<8x48xf32>, vector<48x128xf32>, vector<8x128xf32> -> vector<8x128xf32>
    %c0_15 = arith.constant 0 : index
    %c0_16 = arith.constant 0 : index
    %15 = vector.load %arg7[%c0_15, %c0_16] : memref<8x16xf32, #tpu.memory_space<vmem>>, vector<8x16xf32>
    %16 = arith.mulf %6, %6 : vector<16x128xf32>
    %cst_17 = arith.constant dense<0.000000e+00> : vector<8x128xf32>
    %17 = tpu.matmul %15, %16, %cst_17 {dimension_numbers = #tpu.dot_dimension_numbers<[1], [0], [0], [1], [0, 0, 1, 1], [], []>} : vector<8x16xf32>, vector<16x128xf32>, vector<8x128xf32> -> vector<8x128xf32>
    %18 = arith.addf %14, %17 : vector<8x128xf32>
    %19 = vector.extract_strided_slice %11 {offsets = [0, 0], sizes = [8, 128], strides = [1, 1]} : vector<9x128xf32> to vector<8x128xf32>
    %20 = vector.extract_strided_slice %11 {offsets = [8, 0], sizes = [1, 128], strides = [1, 1]} : vector<9x128xf32> to vector<1x128xf32>
    %21 = arith.mulf %19, %19 : vector<8x128xf32>
    %22 = arith.subf %21, %18 : vector<8x128xf32>
    %cst_18 = arith.constant dense<0.000000e+00> : vector<128xf32>
    %23 = vector.multi_reduction <add>, %22, %cst_18 [0] : vector<8x128xf32> to vector<128xf32>
    %24 = vector.shape_cast %23 : vector<128xf32> to vector<1x128xf32>
    %cst_19 = arith.constant 5.000000e-01 : f32
    %25 = vector.broadcast %cst_19 : f32 to vector<1x128xf32>
    %26 = arith.mulf %25, %24 : vector<1x128xf32>
    %c0_20 = arith.constant 0 : index
    %27 = memref.load %arg8[%c0_20] : memref<1xf32, #tpu.memory_space<smem>>
    %28 = vector.broadcast %27 : f32 to vector<1x128xf32>
    %29 = arith.addf %28, %20 : vector<1x128xf32>
    %30 = arith.addf %29, %26 : vector<1x128xf32>
    %cst_21 = arith.constant 0.000000e+00 : f32
    %cst_22 = arith.constant 5.000000e+00 : f32
    %31 = vector.broadcast %cst_21 : f32 to vector<1x128xf32>
    %32 = arith.maximumf %31, %30 : vector<1x128xf32>
    %33 = vector.broadcast %cst_22 : f32 to vector<1x128xf32>
    %34 = arith.minimumf %33, %32 : vector<1x128xf32>
    %c0_23 = arith.constant 0 : index
    %c0_24 = arith.constant 0 : index
    %35 = vector.load %arg9[%c0_23, %c0_24] : memref<1x128xf32, #tpu.memory_space<vmem>>, vector<1x128xf32>
    tpu.vector_store %arg9[%c0_23, %c0_24], %34 {strides = array<i32>} : memref<1x128xf32, #tpu.memory_space<vmem>>, vector<1x128xf32>,
    return
  }
  func.func @transform_0(%arg0: i32) -> (i32, i32) {
    %c0_i32 = arith.constant 0 : i32
    %c0_i32_0 = arith.constant 0 : i32
    return %c0_i32, %arg0 : i32, i32
  }
  func.func @transform_1(%arg0: i32) -> (i32, i32) {
    %c0_i32 = arith.constant 0 : i32
    %c0_i32_0 = arith.constant 0 : i32
    %c0_i32_1 = arith.constant 0 : i32
    return %c0_i32, %c0_i32_0 : i32, i32
  }
  func.func @transform_2(%arg0: i32) -> (i32, i32) {
    %c0_i32 = arith.constant 0 : i32
    %c0_i32_0 = arith.constant 0 : i32
    %c0_i32_1 = arith.constant 0 : i32
    return %c0_i32, %c0_i32_0 : i32, i32
  }
  func.func @transform_3(%arg0: i32) -> (i32, i32) {
    %c0_i32 = arith.constant 0 : i32
    %c0_i32_0 = arith.constant 0 : i32
    %c0_i32_1 = arith.constant 0 : i32
    return %c0_i32, %c0_i32_0 : i32, i32
  }
  func.func @transform_4(%arg0: i32) -> (i32, i32) {
    %c0_i32 = arith.constant 0 : i32
    %c0_i32_0 = arith.constant 0 : i32
    %c0_i32_1 = arith.constant 0 : i32
    return %c0_i32, %c0_i32_0 : i32, i32
  }
  func.func @transform_5(%arg0: i32) -> (i32, i32) {
    %c0_i32 = arith.constant 0 : i32
    %c0_i32_0 = arith.constant 0 : i32
    %c0_i32_1 = arith.constant 0 : i32
    return %c0_i32, %c0_i32_0 : i32, i32
  }
  func.func @transform_6(%arg0: i32) -> (i32, i32) {
    %c0_i32 = arith.constant 0 : i32
    %c0_i32_0 = arith.constant 0 : i32
    %c0_i32_1 = arith.constant 0 : i32
    return %c0_i32, %c0_i32_0 : i32, i32
  }
  func.func @transform_7(%arg0: i32) -> i32 {
    %c0_i32 = arith.constant 0 : i32
    %c0_i32_0 = arith.constant 0 : i32
    return %c0_i32 : i32
  }
  func.func @transform_8(%arg0: i32) -> (i32, i32) {
    %c0_i32 = arith.constant 0 : i32
    %c0_i32_0 = arith.constant 0 : i32
    return %c0_i32, %arg0 : i32, i32
  }
}

</mosaic_0001>

<bundles_post_ra>
// kernel: tpu_custom_call.1
= control target key start
LH: loop header
LB: loop body
LE: loop exit
PB: predicated region body
PF: predicated region fallthrough
CT: control target
= control target key end

     0   :  { %14 = vsyncpa [#allocation4], 0  ;;  %s851_s0 = inlined_call_operand.hbm [shape: f32[72,128], index: 0, kind: input, shape index: {}]   ;;  %s852_s1 = inlined_call_operand.vmem [shape: f32[16,24], index: 1, kind: input, shape index: {}]   ;;  %s853_s2 = inlined_call_operand.vmem [shape: f32[16,1], index: 2, kind: input, shape index: {}]   ;;  %s854_s3 = inlined_call_operand.hbm [shape: f32[9,48], index: 3, kind: input, shape index: {}]   ;;  %s855_s4 = inlined_call_operand.hbm [shape: f32[9,16], index: 4, kind: input, shape index: {}]   ;;  %s856_s5 = inlined_call_operand.vmem [shape: f32[8,48], index: 5, kind: input, shape index: {}]   ;;  %s857_s6 = inlined_call_operand.hbm [shape: f32[8,16], index: 6, kind: input, shape index: {}]   ;;  %s858_s7 = inlined_call_operand.<no memory space> [shape: f32[1], index: 7, kind: input, shape index: {}]   ;;  %s859_s8 = inlined_call_operand.hbm [shape: f32[1,128], index: 8, kind: output, shape index: {}]  }
   0x1   :  { %15 = vsyncpa [#allocation7], 0 }
   0x2   :  { %16 = vsyncpa [#allocation10], 0 }
   0x3   :  { %17 = vsyncpa [#allocation5], 0  ;;  %s753_s27 = smov [#allocation6]   ;;  %s754_s29 = smov [#allocation3]  }
   0x4   :  { %s39_s28 = sshll.u32 %s753_s27, 4  ;;  %s23_s30 = sshll.u32 %s754_s29, 4  ;;  %s40_s28 = int_to_ptr.vmem [resolvable:$true] %s39_s28  ;;  %s24_s30 = int_to_ptr.vmem [resolvable:$true] %s23_s30 }
   0x5   :  { %s653_s9 = scalar_lea.vmem %s40_s28, 256  ;;  %p658_p1 = scmp.lt.s32.totalorder %s40_s28, %s40_s28 }
   0x6   :  { %p654_p0 = scmp.ne.s32.totalorder %s40_s28, %s653_s9  ;;  %p659_p2 = scmp.lt.s32.totalorder %s653_s9, %s653_s9 }
   0x8   :  { %p660_p3 = por %p659_p2, %p658_p1 }
   0xa   :  { %p661_p4 = pnand %p660_p3, %p654_p0 }
   0xc   :  { %664 = shalt.err (!%p661_p4)
}
   0xd   :  { %s755_s10 = smov 128   ;;  %s756_s11 = smov 8  }
   0xe   :  { %45 = dma.hbm_to_vmem [thread:$0]  %s854_s3, 256, %s40_s28, [#allocation7], %s755_s10, %s755_s10, %s756_s11  }
   0xf   :  { %s673_s14 = scalar_lea.vmem %s24_s30, 1152  ;;  %p678_p6 = scmp.lt.s32.totalorder %s24_s30, %s24_s30 }
  0x10   :  { %p674_p5 = scmp.ne.s32.totalorder %s24_s30, %s673_s14  ;;  %p679_p7 = scmp.lt.s32.totalorder %s673_s14, %s673_s14 }
  0x12   :  { %p680_p8 = por %p679_p7, %p678_p6 }
  0x14   :  { %p681_p9 = pnand %p680_p8, %p674_p5 }
  0x16   :  { %684 = shalt.err (!%p681_p9)
}
  0x17   :  { %29 = dma.hbm_to_vmem [thread:$0]  %s851_s0, 1152, %s24_s30, [#allocation4], %s755_s10, %s755_s10, %s756_s11  }
  0x18   :  { %s757_s17 = smov [#allocation8]   ;;  %s758_s19 = smov [#allocation9]  }
  0x19   :  { %s51_s18 = sshll.u32 %s757_s17, 4  ;;  %s66_s20 = sshll.u32 %s758_s19, 4  ;;  %s52_s18 = int_to_ptr.vmem [resolvable:$true] %s51_s18  ;;  %s67_s20 = int_to_ptr.vmem [resolvable:$true] %s66_s20 }
  0x1a   :  { %s693_s21 = scalar_lea.vmem %s52_s18, 256  ;;  %p698_p11 = scmp.lt.s32.totalorder %s52_s18, %s52_s18 }
  0x1b   :  { %p694_p10 = scmp.ne.s32.totalorder %s52_s18, %s693_s21  ;;  %p699_p12 = scmp.lt.s32.totalorder %s693_s21, %s693_s21 }
  0x1d   :  { %p700_p13 = por %p699_p12, %p698_p11 }
  0x1f   :  { %p701_p0 = pnand %p700_p13, %p694_p10 }
  0x21   :  { %704 = shalt.err (!%p701_p0)
}
  0x22   :  { %57 = dma.hbm_to_vmem [thread:$0]  %s855_s4, 256, %s52_s18, [#allocation7], %s755_s10, %s755_s10, %s756_s11  }
  0x23   :  { %s713_s23 = scalar_lea.vmem %s67_s20, 128  ;;  %p718_p2 = scmp.lt.s32.totalorder %s67_s20, %s67_s20 }
  0x24   :  { %p714_p1 = scmp.ne.s32.totalorder %s67_s20, %s713_s23  ;;  %p719_p3 = scmp.lt.s32.totalorder %s713_s23, %s713_s23 }
  0x26   :  { %p720_p4 = por %p719_p3, %p718_p2 }
  0x28   :  { %p721_p5 = pnand %p720_p4, %p714_p1 }
  0x2a   :  { %724 = shalt.err (!%p721_p5)
}
  0x2b   :  { %69 = dma.hbm_to_vmem [thread:$0]  %s857_s6, 128, %s67_s20, [#allocation10]  }
  0x2c   :  { %745 = dma.done.wait [#allocation4], 1152  }
  0x2d   :  { %746 = vsyncadd [#allocation4], 4294966144 }
  0x2e   :  { %747 = dma.done.wait [#allocation7], 512  }
  0x2f   :  { %748 = vsyncadd [#allocation7], 4294966784 }
  0x30   :  { %749 = dma.done.wait [#allocation10], 128  }
  0x31   :  { %750 = vsyncadd [#allocation10], 4294967168  ;;  %v759_v0 = vmov 0   ;;  %vm107_vm0 = vcmask 195584   ;;  %v92_v1 = vld [vmem:[#allocation3 + $0x40] sm:$0xff]  ;;  %v91_v2 = vld [vmem:[#allocation3 + $0x38] sm:$0xff]  ;;  %v523_v53 = vstv %s858_s7 }
  0x32   :  { %644 = vset.pattern.permute.xlu0 %v759_v0  ;;  %581 = vmatprep.subr.mxu0 %v92_v1  ;;  %v93_v3 = vld [vmem:[%s852_s1] sm:$0xff]  ;;  %v96_v4 = vld [vmem:[%s853_s2 + $0x8] sm:$0xff]  ;;  %v90_v5 = vld [vmem:[#allocation3 + $0x30] sm:$0xff]  ;;  %vm193_vm1 = vcmask 130048   ;;  %v760_v13 = vmov 0.0   ;;  %vm275_vm2 = vcmask 392192  }
  0x33   :  { %582 = vmatpush3.msra.mxu0 %v92_v1  ;;  %587 = vmatprep.mubr.msk.f32.mxu0 %vm107_vm0, %v93_v3  ;;  %v94_v6 = vld [vmem:[%s852_s1 + $0x8] sm:$0xff]  ;;  %v95_v7 = vld [vmem:[%s853_s2] sm:$0xff]  ;;  %v191_v8 = vld [vmem:[#allocation8] sm:$0xff]  ;;  %vm761_vm3 = vmmov 0   ;;  %s762_s10 = smov [#allocation11]  }
  0x34   :  { %583 = vmatprep.subr.mxu0 %v91_v2  ;;  %104 = vperm.xlu0 %644, %v96_v4   ;;  %v89_v9 = vld [vmem:[#allocation3 + $0x28] sm:$0xff]  ;;  %v88_v11 = vld [vmem:[#allocation3 + $0x20] sm:$0xff]  ;;  %v87_v14 = vld [vmem:[#allocation3 + $0x18] sm:$0xff]  ;;  %s535_s11 = sshll.u32 %s762_s10, 4  ;;  %s536_s11 = int_to_ptr.vmem [resolvable:$true] %s535_s11 }
  0x35   :  { %584 = vmatpush3.msra.mxu0 %v91_v2  ;;  %594 = vmatprep.mubr.msk.f32.mxu1 %vm193_vm1, %v191_v8  ;;  %v363_v10 = vmul.f32 %v89_v9, %v89_v9  ;;  %v362_v12 = vmul.f32 %v88_v11, %v88_v11  ;;  %v361_v15 = vmul.f32 %v87_v14, %v87_v14  ;;  %v86_v16 = vld [vmem:[#allocation3 + $0x10] sm:$0xff]  ;;  %v85_v18 = vld [vmem:[#allocation3 + $0x8] sm:$0xff]  ;;  %v84_v20 = vld [vmem:[#allocation3] sm:$0xff]  ;;  %s725_s12 = scalar_lea.vmem %s536_s11, 16  ;;  %s729_s13 = scalar_lea.vmem %s536_s11, 32 }
  0x36   :  { %585 = vmatprep.subr.mxu0 %v90_v5  ;;  %v360_v17 = vmul.f32 %v86_v16, %v86_v16  ;;  %v359_v19 = vmul.f32 %v85_v18, %v85_v18  ;;  %v358_v21 = vmul.f32 %v84_v20, %v84_v20  ;;  %v357_v22 = vld [vmem:[%s856_s5] sm:$0xff]  ;;  %v189_v30 = vld [vmem:[#allocation6] sm:$0xff]  ;;  %v190_v31 = vld [vmem:[#allocation6 + $0x8] sm:$0x1]  ;;  %p726_p6 = scmp.ne.s32.totalorder %s536_s11, %s725_s12  ;;  %p730_p7 = scmp.lt.s32.totalorder %s536_s11, %s536_s11 }
  0x37   :  { %586 = vmatpush3.msra.mxu0 %v90_v5  ;;  %v192_v29 = vld [vmem:[#allocation8 + $0x8] sm:$0x1]  ;;  %v364_v34 = vld [vmem:[#allocation9] sm:$0xff]  ;;  %p731_p8 = scmp.lt.s32.totalorder %s729_s13, %s725_s12 }
  0x38   :  { %588 = vmatmul.mubr.msk.f32.vlgmr.msra.gmra.mxu0 %vm107_vm0, %v94_v6  ;;  %99 = vperm.xlu0 %644, %v95_v7  }
  0x39   :  { %619 = vmatprep.subr.mxu0 %v760_v13  ;;  %631 = vmatprep.mubr.msk.f32.mxu0 %vm761_vm3, %v760_v13  ;;  %p732_p9 = por %p731_p8, %p730_p7 }
  0x3a   :  { %620 = vmatpush3.msra.mxu0 %v363_v10 }
  0x3b   :  { %621 = vmatprep.subr.mxu0 %v760_v13  ;;  %p733_p10 = pnand %p732_p9, %p726_p6 }
  0x3c   :  { %622 = vmatpush3.msra.mxu0 %v362_v12 }
  0x3d   :  { %623 = vmatprep.subr.mxu0 %v760_v13 }
  0x3e   :  { %624 = vmatpush3.msra.mxu0 %v361_v15 }
  0x3f   :  { %625 = vmatprep.subr.mxu0 %v760_v13 }
  0x40   :  { %626 = vmatpush3.msra.mxu0 %v360_v17 }
  0x41   :  { %627 = vmatprep.subr.mxu0 %v760_v13 }
  0x42   :  { %628 = vmatpush3.msra.mxu0 %v359_v19 }
  0x43   :  { %629 = vmatprep.subr.mxu0 %v760_v13 }
  0x44   :  { %630 = vmatpush3.msra.mxu0 %v358_v21 }
  0x45   :  { %632 = vmatmul.mubr.msk.f32.vlgmr.msra.gmra.mxu0 %vm275_vm2, %v357_v22 }
  0xaf   :  { %v105_v23 = vpop.permute.xlu0 %104 }
  0xb3   :  { %v100_v26 = vpop.permute.xlu0 %99 }
  0xf8   :  { %v589_v24 = vpop.f32.mrf.mxu0 }
  0xf9   :  { %v186_v25 = vadd.f32 %v589_v24, %v105_v23 }
  0xfa   :  { %v180_v27 = vpop.f32.mrf.mxu0 }
  0xfb   :  { %v181_v28 = vadd.f32 %v180_v27, %v100_v26  ;;  %590 = vmatprep.subr.mxu1 %v186_v25  ;;  %v366_v32 = vmul.f32 %v186_v25, %v186_v25 }
  0xfc   :  { %591 = vmatpush3.msra.mxu1 %v186_v25 }
  0xfd   :  { %592 = vmatprep.subr.mxu1 %v181_v28  ;;  %v365_v33 = vmul.f32 %v181_v28, %v181_v28 }
  0xfe   :  { %593 = vmatpush3.msra.mxu1 %v181_v28 }
  0xff   :  { %595 = vmatmul.mubr.msk.f32.vlgmr.msra.gmra.mxu1 %vm193_vm1, %v192_v29  ;;  %597 = vmatprep.subr.mxu1 %v89_v9 }
 0x100   :  { %598 = vmatpush3.msra.mxu1 %v89_v9  ;;  %609 = vmatprep.mubr.msk.f32.mxu1 %vm275_vm2, %v189_v30 }
 0x101   :  { %599 = vmatprep.subr.mxu1 %v88_v11 }
 0x102   :  { %600 = vmatpush3.msra.mxu1 %v88_v11 }
 0x103   :  { %601 = vmatprep.subr.mxu1 %v87_v14 }
 0x104   :  { %602 = vmatpush3.msra.mxu1 %v87_v14 }
 0x105   :  { %603 = vmatprep.subr.mxu1 %v86_v16  ;;  %v509_v35 = vpop.f32.mrf.mxu0 }
 0x106   :  { %604 = vmatpush3.msra.mxu1 %v86_v16 }
 0x107   :  { %605 = vmatprep.subr.mxu1 %v85_v18  ;;  %v633_v36 = vpop.f32.mrf.mxu0 }
 0x108   :  { %606 = vmatpush3.msra.mxu1 %v85_v18 }
 0x109   :  { %607 = vmatprep.subr.mxu1 %v84_v20 }
 0x10a   :  { %608 = vmatpush3.msra.mxu1 %v84_v20 }
 0x10b   :  { %610 = vmatmul.mubr.msk.f32.vlgmr.msra.gmra.mxu1 %vm275_vm2, %v190_v31  ;;  %612 = vmatprep.subr.mxu1 %v760_v13 }
 0x10c   :  { %613 = vmatpush3.msra.mxu1 %v366_v32  ;;  %616 = vmatprep.mubr.msk.f32.mxu1 %vm761_vm3, %v760_v13 }
 0x10d   :  { %614 = vmatprep.subr.mxu1 %v760_v13 }
 0x10e   :  { %615 = vmatpush3.msra.mxu1 %v365_v33 }
 0x10f   :  { %617 = vmatmul.mubr.msk.f32.vlgmr.msra.gmra.mxu1 %vm193_vm1, %v364_v34 }
 0x1bf   :  { %v596_v37 = vpop.f32.mrf.mxu1 }
 0x1c1   :  { %v266_v38 = vpop.f32.mrf.mxu1 }
 0x1cb   :  { %v611_v39 = vpop.f32.mrf.mxu1 }
 0x1cc   :  { %v354_v51 = vadd.f32 %v611_v39, %v596_v37 }
 0x1cd   :  { %v348_v40 = vpop.f32.mrf.mxu1 }
 0x1ce   :  { %v349_v41 = vadd.f32 %v348_v40, %v266_v38  ;;  %v524_v55 = vadd.f32 %v523_v53, %v354_v51 }
 0x1cf   :  { %v436_v42 = vpop.f32.mrf.mxu1 }
 0x1d0   :  { %v513_v43 = vmul.f32 %v349_v41, %v349_v41  ;;  %v510_v44 = vadd.f32 %v509_v35, %v436_v42 }
 0x1d1   :  { %v618_v45 = vpop.f32.mrf.mxu1 }
 0x1d2   :  { %v514_v46 = vsub.f32 %v513_v43, %v510_v44 }
 0x1d4   :  { %v515_v47 = vrot.slane %v514_v46, 4 }
 0x1d6   :  { %v516_v48 = vadd.f32 %v515_v47, %v514_v46 }
 0x1d8   :  { %v517_v49 = vrot.slane %v516_v48, 2 }
 0x1da   :  { %v518_v50 = vadd.f32 %v517_v49, %v516_v48 }
 0x1dc   :  { %v519_v52 = vrot.slane %v518_v50, 1 }
 0x1de   :  { %v520_v54 = vadd.f32 %v519_v52, %v518_v50 }
 0x1e0   :  { %v521_v56 = vmul.f32 0.5, %v520_v54 }
 0x1e2   :  { %v525_v57 = vadd.f32 %v524_v55, %v521_v56 }
 0x1e4   :  { %v526_v58 = vmax.f32 %v525_v57, 0.0 }
 0x1e6   :  { %v527_v59 = vmin.f32 %v526_v58, 5.0 }
 0x1e8   :  { %528 = vst [vmem:[#allocation11] sm:$0x1] %v527_v59 }
 0x1e9   :  { %736 = shalt.err (!%p733_p10)
}
 0x1ea   :  { %538 = dma.vmem_to_hbm [thread:$0]  %s536_s11, 16, %s859_s8, [#allocation5]  }
 0x1eb   :  { %751 = dma.done.wait [#allocation5], 16  }
 0x1ec   :  { %752 = vsyncadd [#allocation5], 4294967280 }
 0x1ed   :  { %542 = vsyncpa [#allocation4], 1 }
 0x1ee   :  { %543 = vsyncpa [#allocation7], 1 }
 0x1ef   :  { %544 = vsyncpa [#allocation10], 1 }
 0x1f0   :  { %545 = vsyncpa [#allocation5], 1 }

</bundles_post_ra>
